<compile_context>
chip_gen: v7x
topology: tpu7x:2x2x1
jax: 0.10.0
libtpu: 0.0.40
codegen_flags: <defaults>
</compile_context>

<pallas_src>
import jax
import jax.numpy as jnp
from jax import lax
from jax.experimental import pallas as pl
from jax.experimental.pallas import tpu as pltpu

HIDDEN_PAD = 128  # pad hidden dims 100 / 50 / 20 -> 128 (lane multiple)


def _round_up(n, m):
    return (n + m - 1) // m * m


def mlp_kernel(x_ref, w1_ref, b1_ref, w2_ref, b2_ref, w3_ref, b3_ref,
               w4t_ref, b4_ref, o_ref):
    """One batch tile of the 4-layer MLP; weights/biases stay VMEM-resident across tiles."""
    bf16 = jnp.bfloat16
    x = x_ref[...].astype(bf16)                                        # (TB, in_dim)
    h = jnp.dot(x, w1_ref[...], preferred_element_type=jnp.float32) + b1_ref[...]
    h = jnp.maximum(h, 0.0).astype(bf16)                               # (TB, 128)
    h = jnp.dot(h, w2_ref[...], preferred_element_type=jnp.float32) + b2_ref[...]
    h = jnp.maximum(h, 0.0).astype(bf16)
    h = jnp.dot(h, w3_ref[...], preferred_element_type=jnp.float32) + b3_ref[...]
    h = jnp.maximum(h, 0.0).astype(bf16)
    # Final layer computed transposed (contract last dims of both operands on the MXU):
    # (OUT_PAD, 128) x (TB, 128) -> (OUT_PAD, TB)  => lane-dense output stores.
    z = lax.dot_general(w4t_ref[...], h, (((1,), (1,)), ((), ())),
                        preferred_element_type=jnp.float32) + b4_ref[...]
    # Sigmoid kept on the EUP path: exp + approximate reciprocal.
    o_ref[...] = pl.reciprocal(1.0 + jnp.exp(-z), approx=True)


def network_forward(x, padded_params, output_dim, tile_b=2048):
    """x: (B, input_dim) float. Returns sigmoid(MLP(x)).squeeze(-1), like the torch module."""
    w1, b1, w2, b2, w3, b3, w4t, b4 = padded_params
    B, in_dim = x.shape
    out_pad = w4t.shape[0]

    # Batch tile: multiple of 128 (lane-dense output last dim), capped for small B.
    tile_b = max(128, min(tile_b, _round_up(B, 128)))
    b_pad = _round_up(B, tile_b)
    if b_pad != B:
        x = jnp.pad(x, ((0, b_pad - B), (0, 0)))
    num_tiles = b_pad // tile_b

    def const_spec(arr):
        n = arr.ndim
        return pl.BlockSpec(arr.shape, lambda i: (0,) * n)

    out = pl.pallas_call(
        mlp_kernel,
        out_shape=jax.ShapeDtypeStruct((out_pad, b_pad), jnp.float32),
        grid=(num_tiles,),
        in_specs=[
            pl.BlockSpec((tile_b, in_dim), lambda i: (i, 0)),   # x: tiled over batch
            const_spec(w1), const_spec(b1),                     # weights: VMEM-resident
            const_spec(w2), const_spec(b2),
            const_spec(w3), const_spec(b3),
            const_spec(w4t), const_spec(b4),
        ],
        out_specs=pl.BlockSpec((out_pad, tile_b), lambda i: (0, i)),
        compiler_params=pltpu.CompilerParams(
            dimension_semantics=("parallel",)),                 # megacore-shardable on v7x
    )(x, w1, b1, w2, b2, w3, b3, w4t, b4)

    if output_dim == 1:
        return out[0, :B]          # == torch .squeeze(-1) for output_dim == 1
    return out[:output_dim, :B].T


def init_raw_params(key, input_dim, output_dim):
    """Unpadded params with nn.Linear-style init, stored as (in, out) / (1, out)."""
    dims = [(input_dim, 100), (100, 50), (50, 20), (20, output_dim)]
    params = []
    for din, dout in dims:
        key, kw, kb = jax.random.split(key, 3)
        bound = 1.0 / jnp.sqrt(float(din))
        w = jax.random.uniform(kw, (din, dout), jnp.float32, -bound, bound)
        b = jax.random.uniform(kb, (1, dout), jnp.float32, -bound, bound)
        params += [w, b]
    return params


def pad_params(raw_params, input_dim, output_dim):
    """Zero-pad hidden dims to 128, cast weights to bf16, store last layer transposed."""
    w1, b1, w2, b2, w3, b3, w4, b4 = raw_params
    H = HIDDEN_PAD
    out_pad = _round_up(output_dim, 8)

    def pad2(a, rows, cols):
        return jnp.pad(a, ((0, rows - a.shape[0]), (0, cols - a.shape[1])))

    return (
        pad2(w1, input_dim, H).astype(jnp.bfloat16), pad2(b1, 1, H),
        pad2(w2, H, H).astype(jnp.bfloat16),         pad2(b2, 1, H),
        pad2(w3, H, H).astype(jnp.bfloat16),         pad2(b3, 1, H),
        pad2(w4.T, out_pad, H).astype(jnp.bfloat16), pad2(b4.T, out_pad, 1),
    )


def reference_forward(x, raw_params):
    """Pure-JAX reference mirroring the kernel's bf16-matmul / f32-accumulate math."""
    w1, b1, w2, b2, w3, b3, w4, b4 = raw_params
    bf16 = jnp.bfloat16

    def dense(h, w, b, relu=True):
        z = jnp.dot(h.astype(bf16), w.astype(bf16),
                    preferred_element_type=jnp.float32) + b
        return jnp.maximum(z, 0.0) if relu else z

    h = dense(x, w1, b1)
    h = dense(h, w2, b2)
    h = dense(h, w3, b3)
    z = dense(h, w4, b4, relu=False)
    return jnp.squeeze(jax.nn.sigmoid(z), axis=-1)


if __name__ == "__main__":
    key = jax.random.PRNGKey(0)
    B, input_dim, output_dim = 2, 32, 1

    kx, kp = jax.random.split(key)
    x = jax.random.normal(kx, (B, input_dim), jnp.float32)
    raw_params = init_raw_params(kp, input_dim, output_dim)
    params = pad_params(raw_params, input_dim, output_dim)

    y = network_forward(x, params, output_dim)
    y = jax.block_until_ready(y)

    y_ref = reference_forward(x, raw_params)
    assert y.shape == (B,), y.shape
    assert jnp.allclose(y, y_ref, atol=5e-3, rtol=5e-3), (y, y_ref)

    print("KERNEL_OK")
</pallas_src>

<mosaic_0001>
module attributes {stable_mosaic.version = 11 : i64} {
  func.func @mlp_kernel(%arg0: i32, %arg1: memref<128x32xf32, #tpu.memory_space<vmem>>, %arg2: memref<32x128xbf16, #tpu.memory_space<vmem>>, %arg3: memref<1x128xf32, #tpu.memory_space<vmem>>, %arg4: memref<128x128xbf16, #tpu.memory_space<vmem>>, %arg5: memref<1x128xf32, #tpu.memory_space<vmem>>, %arg6: memref<128x128xbf16, #tpu.memory_space<vmem>>, %arg7: memref<1x128xf32, #tpu.memory_space<vmem>>, %arg8: memref<8x128xbf16, #tpu.memory_space<vmem>>, %arg9: memref<8x1xf32, #tpu.memory_space<vmem>>, %arg10: memref<8x128xf32, #tpu.memory_space<vmem>>) attributes {dimension_semantics = [#tpu.dimension_semantics<parallel>], iteration_bounds = array<i64: 1>, scalar_prefetch = 0 : i64, scratch_operands = 0 : i64, tpu.core_type = #tpu.core_type<tc>, window_params = [{transform_indices = @transform_0, window_bounds = array<i64: 128, 32>}, {pipeline_mode = #tpu.pipeline_mode<synchronous>, transform_indices = @transform_1, window_bounds = array<i64: 32, 128>}, {pipeline_mode = #tpu.pipeline_mode<synchronous>, transform_indices = @transform_2, window_bounds = array<i64: 1, 128>}, {pipeline_mode = #tpu.pipeline_mode<synchronous>, transform_indices = @transform_3, window_bounds = array<i64: 128, 128>}, {pipeline_mode = #tpu.pipeline_mode<synchronous>, transform_indices = @transform_4, window_bounds = array<i64: 1, 128>}, {pipeline_mode = #tpu.pipeline_mode<synchronous>, transform_indices = @transform_5, window_bounds = array<i64: 128, 128>}, {pipeline_mode = #tpu.pipeline_mode<synchronous>, transform_indices = @transform_6, window_bounds = array<i64: 1, 128>}, {pipeline_mode = #tpu.pipeline_mode<synchronous>, transform_indices = @transform_7, window_bounds = array<i64: 8, 128>}, {pipeline_mode = #tpu.pipeline_mode<synchronous>, transform_indices = @transform_8, window_bounds = array<i64: 8, 1>}, {transform_indices = @transform_9, window_bounds = array<i64: 8, 128>}]} {
    %c0 = arith.constant 0 : index
    %c0_0 = arith.constant 0 : index
    %0 = vector.load %arg1[%c0, %c0_0] : memref<128x32xf32, #tpu.memory_space<vmem>>, vector<128x32xf32>
    %1 = arith.truncf %0 : vector<128x32xf32> to vector<128x32xbf16>
    %c0_1 = arith.constant 0 : index
    %c0_2 = arith.constant 0 : index
    %2 = vector.load %arg2[%c0_1, %c0_2] : memref<32x128xbf16, #tpu.memory_space<vmem>>, vector<32x128xbf16>
    %cst = arith.constant dense<0.000000e+00> : vector<128x128xf32>
    %3 = tpu.matmul %1, %2, %cst {dimension_numbers = #tpu.dot_dimension_numbers<[1], [0], [0], [1], [0, 0, 1, 1], [], []>} : vector<128x32xbf16>, vector<32x128xbf16>, vector<128x128xf32> -> vector<128x128xf32>
    %c0_3 = arith.constant 0 : index
    %c0_4 = arith.constant 0 : index
    %4 = vector.load %arg3[%c0_3, %c0_4] : memref<1x128xf32, #tpu.memory_space<vmem>>, vector<1x128xf32>
    %5 = vector.broadcast %4 : vector<1x128xf32> to vector<128x128xf32>
    %6 = arith.addf %3, %5 : vector<128x128xf32>
    %cst_5 = arith.constant 0.000000e+00 : f32
    %7 = vector.broadcast %cst_5 : f32 to vector<128x128xf32>
    %8 = arith.maximumf %6, %7 : vector<128x128xf32>
    %9 = arith.truncf %8 : vector<128x128xf32> to vector<128x128xbf16>
    %c0_6 = arith.constant 0 : index
    %c0_7 = arith.constant 0 : index
    %10 = vector.load %arg4[%c0_6, %c0_7] : memref<128x128xbf16, #tpu.memory_space<vmem>>, vector<128x128xbf16>
    %cst_8 = arith.constant dense<0.000000e+00> : vector<128x128xf32>
    %11 = tpu.matmul %9, %10, %cst_8 {dimension_numbers = #tpu.dot_dimension_numbers<[1], [0], [0], [1], [0, 0, 1, 1], [], []>} : vector<128x128xbf16>, vector<128x128xbf16>, vector<128x128xf32> -> vector<128x128xf32>
    %c0_9 = arith.constant 0 : index
    %c0_10 = arith.constant 0 : index
    %12 = vector.load %arg5[%c0_9, %c0_10] : memref<1x128xf32, #tpu.memory_space<vmem>>, vector<1x128xf32>
    %13 = vector.broadcast %12 : vector<1x128xf32> to vector<128x128xf32>
    %14 = arith.addf %11, %13 : vector<128x128xf32>
    %cst_11 = arith.constant 0.000000e+00 : f32
    %15 = vector.broadcast %cst_11 : f32 to vector<128x128xf32>
    %16 = arith.maximumf %14, %15 : vector<128x128xf32>
    %17 = arith.truncf %16 : vector<128x128xf32> to vector<128x128xbf16>
    %c0_12 = arith.constant 0 : index
    %c0_13 = arith.constant 0 : index
    %18 = vector.load %arg6[%c0_12, %c0_13] : memref<128x128xbf16, #tpu.memory_space<vmem>>, vector<128x128xbf16>
    %cst_14 = arith.constant dense<0.000000e+00> : vector<128x128xf32>
    %19 = tpu.matmul %17, %18, %cst_14 {dimension_numbers = #tpu.dot_dimension_numbers<[1], [0], [0], [1], [0, 0, 1, 1], [], []>} : vector<128x128xbf16>, vector<128x128xbf16>, vector<128x128xf32> -> vector<128x128xf32>
    %c0_15 = arith.constant 0 : index
    %c0_16 = arith.constant 0 : index
    %20 = vector.load %arg7[%c0_15, %c0_16] : memref<1x128xf32, #tpu.memory_space<vmem>>, vector<1x128xf32>
    %21 = vector.broadcast %20 : vector<1x128xf32> to vector<128x128xf32>
    %22 = arith.addf %19, %21 : vector<128x128xf32>
    %cst_17 = arith.constant 0.000000e+00 : f32
    %23 = vector.broadcast %cst_17 : f32 to vector<128x128xf32>
    %24 = arith.maximumf %22, %23 : vector<128x128xf32>
    %25 = arith.truncf %24 : vector<128x128xf32> to vector<128x128xbf16>
    %c0_18 = arith.constant 0 : index
    %c0_19 = arith.constant 0 : index
    %26 = vector.load %arg8[%c0_18, %c0_19] : memref<8x128xbf16, #tpu.memory_space<vmem>>, vector<8x128xbf16>
    %cst_20 = arith.constant dense<0.000000e+00> : vector<8x128xf32>
    %27 = tpu.matmul %26, %25, %cst_20 {dimension_numbers = #tpu.dot_dimension_numbers<[1], [1], [0], [0], [0, 0, 1, 0], [], []>} : vector<8x128xbf16>, vector<128x128xbf16>, vector<8x128xf32> -> vector<8x128xf32>
    %c0_21 = arith.constant 0 : index
    %c0_22 = arith.constant 0 : index
    %28 = vector.load %arg9[%c0_21, %c0_22] : memref<8x1xf32, #tpu.memory_space<vmem>>, vector<8x1xf32>
    %29 = vector.broadcast %28 : vector<8x1xf32> to vector<8x128xf32>
    %30 = arith.addf %27, %29 : vector<8x128xf32>
    %cst_23 = arith.constant 0.000000e+00 : f32
    %31 = vector.broadcast %cst_23 : f32 to vector<8x128xf32>
    %32 = arith.subf %31, %30 : vector<8x128xf32>
    %33 = math.exp %32 : vector<8x128xf32>
    %cst_24 = arith.constant 1.000000e+00 : f32
    %34 = vector.broadcast %cst_24 : f32 to vector<8x128xf32>
    %35 = arith.addf %34, %33 : vector<8x128xf32>
    %36 = tpu.reciprocal %35 {approx = true} : vector<8x128xf32> -> vector<8x128xf32>
    %c0_25 = arith.constant 0 : index
    %c0_26 = arith.constant 0 : index
    %37 = vector.load %arg10[%c0_25, %c0_26] : memref<8x128xf32, #tpu.memory_space<vmem>>, vector<8x128xf32>
    tpu.vector_store %arg10[%c0_25, %c0_26], %36 {strides = array<i32>} : memref<8x128xf32, #tpu.memory_space<vmem>>, vector<8x128xf32>,
    return
  }
  func.func @transform_0(%arg0: i32) -> (i32, i32) {
    %c0_i32 = arith.constant 0 : i32
    %c0_i32_0 = arith.constant 0 : i32
    return %arg0, %c0_i32 : i32, i32
  }
  func.func @transform_1(%arg0: i32) -> (i32, i32) {
    %c0_i32 = arith.constant 0 : i32
    %c0_i32_0 = arith.constant 0 : i32
    %c0_i32_1 = arith.constant 0 : i32
    return %c0_i32, %c0_i32_0 : i32, i32
  }
  func.func @transform_2(%arg0: i32) -> (i32, i32) {
    %c0_i32 = arith.constant 0 : i32
    %c0_i32_0 = arith.constant 0 : i32
    %c0_i32_1 = arith.constant 0 : i32
    return %c0_i32, %c0_i32_0 : i32, i32
  }
  func.func @transform_3(%arg0: i32) -> (i32, i32) {
    %c0_i32 = arith.constant 0 : i32
    %c0_i32_0 = arith.constant 0 : i32
    %c0_i32_1 = arith.constant 0 : i32
    return %c0_i32, %c0_i32_0 : i32, i32
  }
  func.func @transform_4(%arg0: i32) -> (i32, i32) {
    %c0_i32 = arith.constant 0 : i32
    %c0_i32_0 = arith.constant 0 : i32
    %c0_i32_1 = arith.constant 0 : i32
    return %c0_i32, %c0_i32_0 : i32, i32
  }
  func.func @transform_5(%arg0: i32) -> (i32, i32) {
    %c0_i32 = arith.constant 0 : i32
    %c0_i32_0 = arith.constant 0 : i32
    %c0_i32_1 = arith.constant 0 : i32
    return %c0_i32, %c0_i32_0 : i32, i32
  }
  func.func @transform_6(%arg0: i32) -> (i32, i32) {
    %c0_i32 = arith.constant 0 : i32
    %c0_i32_0 = arith.constant 0 : i32
    %c0_i32_1 = arith.constant 0 : i32
    return %c0_i32, %c0_i32_0 : i32, i32
  }
  func.func @transform_7(%arg0: i32) -> (i32, i32) {
    %c0_i32 = arith.constant 0 : i32
    %c0_i32_0 = arith.constant 0 : i32
    %c0_i32_1 = arith.constant 0 : i32
    return %c0_i32, %c0_i32_0 : i32, i32
  }
  func.func @transform_8(%arg0: i32) -> (i32, i32) {
    %c0_i32 = arith.constant 0 : i32
    %c0_i32_0 = arith.constant 0 : i32
    %c0_i32_1 = arith.constant 0 : i32
    return %c0_i32, %c0_i32_0 : i32, i32
  }
  func.func @transform_9(%arg0: i32) -> (i32, i32) {
    %c0_i32 = arith.constant 0 : i32
    %c0_i32_0 = arith.constant 0 : i32
    return %c0_i32, %arg0 : i32, i32
  }
}

</mosaic_0001>

<bundles_post_ra>
// kernel: tpu_custom_call.1
= control target key start
LH: loop header
LB: loop body
LE: loop exit
PB: predicated region body
PF: predicated region fallthrough
CT: control target
= control target key end

     0   :  { %vm81_vm0 = vcmask 261120   ;;  %s1113_s0 = inlined_call_operand.vmem [shape: f32[128,32], index: 0, kind: input, shape index: {}]   ;;  %s1114_s1 = inlined_call_operand.vmem [shape: bf16[32,128], index: 1, kind: input, shape index: {}]   ;;  %s1115_s2 = inlined_call_operand.vmem [shape: f32[1,128], index: 2, kind: input, shape index: {}]   ;;  %s1116_s3 = inlined_call_operand.vmem [shape: bf16[128,128], index: 3, kind: input, shape index: {}]   ;;  %s1117_s4 = inlined_call_operand.vmem [shape: f32[1,128], index: 4, kind: input, shape index: {}]   ;;  %s1118_s5 = inlined_call_operand.vmem [shape: bf16[128,128], index: 5, kind: input, shape index: {}]   ;;  %s1119_s6 = inlined_call_operand.vmem [shape: f32[1,128], index: 6, kind: input, shape index: {}]   ;;  %s1120_s7 = inlined_call_operand.vmem [shape: bf16[8,128], index: 7, kind: input, shape index: {}]   ;;  %s1121_s8 = inlined_call_operand.vmem [shape: f32[8,1], index: 8, kind: input, shape index: {}]   ;;  %s1122_s9 = inlined_call_operand.hbm [shape: f32[8,128], index: 9, kind: output, shape index: {}]  }
   0x1   :  { %v867_v0 = vld [vmem:[%s1114_s1] sm:$0xff]   ;;  %v868_v1 = vld [vmem:[%s1114_s1 + $0x8] sm:$0xff]   ;;  %v36_v5 = vld [vmem:[%s1113_s0 + $0x10] sm:$0xff] }
   0x2   :  { %758 = vmatprep.subr.bf16.mxu0 %v867_v0  ;;  %v34_v2 = vld [vmem:[%s1113_s0] sm:$0xff]  ;;  %v35_v3 = vld [vmem:[%s1113_s0 + $0x8] sm:$0xff]  ;;  %v37_v6 = vld [vmem:[%s1113_s0 + $0x18] sm:$0xff] }
   0x3   :  { %759 = vmatpush3.bf16.msra.mxu0 %v867_v0  ;;  %v50_v4 = vpack.c.bf16 %v35_v3, %v34_v2  ;;  %v38_v7 = vld [vmem:[%s1113_s0 + $0x20] sm:$0xff]  ;;  %v39_v8 = vld [vmem:[%s1113_s0 + $0x28] sm:$0xff]  ;;  %v51_v9 = vpack.c.bf16 %v37_v6, %v36_v5  ;;  %v40_v12 = vld [vmem:[%s1113_s0 + $0x30] sm:$0xff] }
   0x4   :  { %760 = vmatprep.subr.bf16.mxu0 %v868_v1  ;;  %v52_v10 = vpack.c.bf16 %v39_v8, %v38_v7  ;;  %v869_v11 = vld [vmem:[%s1116_s3] sm:$0xff]   ;;  %v41_v13 = vld [vmem:[%s1113_s0 + $0x38] sm:$0xff]  ;;  %v870_v14 = vld [vmem:[%s1116_s3 + $0x8] sm:$0xff]  }
   0x5   :  { %762 = vmatprep.mubr.msk.bf16.mxu0 %vm81_vm0, %v50_v4  ;;  %v42_v15 = vld [vmem:[%s1113_s0 + $0x40] sm:$0xff]  ;;  %778 = vmatprep.subr.bf16.mxu1 %v869_v11  ;;  %v43_v16 = vld [vmem:[%s1113_s0 + $0x48] sm:$0xff]  ;;  %v871_v17 = vld [vmem:[%s1116_s3 + $0x10] sm:$0xff]   ;;  %v53_v18 = vpack.c.bf16 %v41_v13, %v40_v12 }
   0x6   :  { %779 = vmatpush3.bf16.msra.mxu1 %v869_v11  ;;  %v872_v19 = vld [vmem:[%s1116_s3 + $0x18] sm:$0xff]   ;;  %v54_v20 = vpack.c.bf16 %v43_v16, %v42_v15  ;;  %v44_v21 = vld [vmem:[%s1113_s0 + $0x50] sm:$0xff]  ;;  %v46_v23 = vld [vmem:[%s1113_s0 + $0x60] sm:$0xff] }
   0x7   :  { %761 = vmatpush3.bf16.msra.mxu0 %v868_v1  ;;  %780 = vmatprep.subr.bf16.mxu1 %v870_v14  ;;  %v45_v22 = vld [vmem:[%s1113_s0 + $0x58] sm:$0xff]  ;;  %v47_v24 = vld [vmem:[%s1113_s0 + $0x68] sm:$0xff]  ;;  %v873_v25 = vld [vmem:[%s1116_s3 + $0x20] sm:$0xff]  }
   0xa   :  { %763 = vmatmul.mubr.msk.bf16.vlgmr.msra.gmra.mrb[0].mxu0 %vm81_vm0, %v51_v9  ;;  %781 = vmatpush3.bf16.msra.mxu1 %v870_v14 }
   0xb   :  { %766 = vmatprep.mubr.msk.bf16.mxu0 %vm81_vm0, %v52_v10  ;;  %782 = vmatprep.subr.bf16.mxu1 %v871_v17 }
   0xe   :  { %783 = vmatpush3.bf16.msra.mxu1 %v871_v17 }
   0xf   :  { %784 = vmatprep.subr.bf16.mxu1 %v872_v19 }
  0x12   :  { %767 = vmatmul.mubr.msk.bf16.gmra.mrb[4].mxu0 %vm81_vm0, %v53_v18 }
  0x13   :  { %770 = vmatprep.mubr.msk.bf16.mxu0 %vm81_vm0, %v54_v20 }
  0x14   :  { %14 = vsyncpa [#allocation3], 0  ;;  %v55_v26 = vpack.c.bf16 %v45_v22, %v44_v21  ;;  %v56_v27 = vpack.c.bf16 %v47_v24, %v46_v23  ;;  %785 = vmatpush3.bf16.msra.mxu1 %v872_v19  ;;  %v874_v28 = vld [vmem:[%s1116_s3 + $0x28] sm:$0xff]   ;;  %v48_v29 = vld [vmem:[%s1113_s0 + $0x70] sm:$0xff]  ;;  %vm914_vm1 = vmmov 0   ;;  %s916_s14 = smov [#allocation2]  }
  0x15   :  { %786 = vmatprep.subr.bf16.mxu1 %v873_v25  ;;  %v49_v30 = vld [vmem:[%s1113_s0 + $0x78] sm:$0xff]  ;;  %v875_v32 = vld [vmem:[%s1116_s3 + $0x30] sm:$0xff]   ;;  %v877_v34 = vld [vmem:[%s1118_s5] sm:$0xff]   ;;  %s670_s15 = sshll.u32 %s916_s14, 4  ;;  %s671_s15 = int_to_ptr.vmem [resolvable:$true] %s670_s15 }
  0x16   :  { %v57_v31 = vpack.c.bf16 %v49_v30, %v48_v29  ;;  %v876_v33 = vld [vmem:[%s1116_s3 + $0x38] sm:$0xff]   ;;  %v878_v35 = vld [vmem:[%s1118_s5 + $0x8] sm:$0xff]   ;;  %810 = vmatprep.subr.bf16.mxu0 %v877_v34  ;;  %v879_v36 = vld [vmem:[%s1118_s5 + $0x10] sm:$0xff]   ;;  %s889_s16 = scalar_lea.vmem %s671_s15, 128  ;;  %p894_p1 = scmp.lt.s32.totalorder %s671_s15, %s671_s15 }
  0x17   :  { %811 = vmatpush3.bf16.msra.mxu0 %v877_v34  ;;  %v880_v37 = vld [vmem:[%s1118_s5 + $0x18] sm:$0xff]   ;;  %v881_v38 = vld [vmem:[%s1118_s5 + $0x20] sm:$0xff]   ;;  %v882_v39 = vld [vmem:[%s1118_s5 + $0x28] sm:$0xff]   ;;  %p890_p0 = scmp.ne.s32.totalorder %s671_s15, %s889_s16  ;;  %p895_p2 = scmp.lt.s32.totalorder %s889_s16, %s889_s16 }
  0x18   :  { %787 = vmatpush3.bf16.msra.mxu1 %v873_v25  ;;  %812 = vmatprep.subr.bf16.mxu0 %v878_v35  ;;  %v678_v40 = vld [vmem:[%s1115_s2] ss:$0 sm:$0xff]  ;;  %v884_v34 = vld [vmem:[%s1118_s5 + $0x38] sm:$0xff]  }
  0x19   :  { %788 = vmatprep.subr.bf16.mxu1 %v874_v28  ;;  %p896_p3 = por %p895_p2, %p894_p1 }
  0x1a   :  { %771 = vmatmul.mubr.msk.bf16.gmra.mrb[8].mxu0 %vm81_vm0, %v55_v26 }
  0x1b   :  { %774 = vmatprep.mubr.msk.bf16.mxu0 %vm81_vm0, %v56_v27  ;;  %813 = vmatpush3.bf16.msra.mxu0 %v878_v35  ;;  %v689_v35 = vld [vmem:[%s1117_s4] ss:$0 sm:$0xff]  ;;  %p897_p4 = pnand %p896_p3, %p890_p0 }
  0x1c   :  { %789 = vmatpush3.bf16.msra.mxu1 %v874_v28  ;;  %814 = vmatprep.subr.bf16.mxu0 %v879_v36 }
  0x1d   :  { %790 = vmatprep.subr.bf16.mxu1 %v875_v32 }
  0x1f   :  { %815 = vmatpush3.bf16.msra.mxu0 %v879_v36 }
  0x20   :  { %791 = vmatpush3.bf16.msra.mxu1 %v875_v32  ;;  %816 = vmatprep.subr.bf16.mxu0 %v880_v37 }
  0x21   :  { %792 = vmatprep.subr.bf16.mxu1 %v876_v33 }
  0x22   :  { %775 = vmatmul.mubr.msk.bf16.gmra.mrb[12].mxu0 %vm81_vm0, %v57_v31 }
  0x23   :  { %817 = vmatpush3.bf16.msra.mxu0 %v880_v37 }
  0x24   :  { %793 = vmatpush3.bf16.msra.mxu1 %v876_v33  ;;  %818 = vmatprep.subr.bf16.mxu0 %v881_v38  ;;  %v883_v33 = vld [vmem:[%s1118_s5 + $0x30] sm:$0xff]  }
  0x27   :  { %819 = vmatpush3.bf16.msra.mxu0 %v881_v38 }
  0x28   :  { %820 = vmatprep.subr.bf16.mxu0 %v882_v39 }
  0x2b   :  { %821 = vmatpush3.bf16.msra.mxu0 %v882_v39 }
  0x2c   :  { %822 = vmatprep.subr.bf16.mxu0 %v883_v33 }
  0x2f   :  { %823 = vmatpush3.bf16.msra.mxu0 %v883_v33 }
  0x30   :  { %824 = vmatprep.subr.bf16.mxu0 %v884_v34 }
  0x33   :  { %825 = vmatpush3.bf16.msra.mxu0 %v884_v34 }
  0xdd   :  { %v764_v41 = vpop.f32.mrb[0].mxu0 }
  0xde   :  { %v149_v42 = vadd.f32 %v764_v41, %v678_v40  ;;  %v140_v43 = vpop.f32.mrb[1].mxu0 }
  0xdf   :  { %v141_v44 = vadd.f32 %v678_v40, %v140_v43  ;;  %v765_v45 = vpop.f32.mrb[2].mxu0 }
  0xe0   :  { %v152_v46 = vadd.f32 %v765_v45, %v678_v40  ;;  %v143_v47 = vpop.f32.mrb[3].mxu0  ;;  %v205_v49 = vmax.f32 %v149_v42, 0.0 }
  0xe1   :  { %v144_v48 = vadd.f32 %v678_v40, %v143_v47  ;;  %v203_v51 = vmax.f32 %v141_v44, 0.0 }
  0xe2   :  { %v206_v50 = vmax.f32 %v152_v46, 0.0 }
  0xe3   :  { %v204_v52 = vmax.f32 %v144_v48, 0.0 }
  0xe4   :  { %v220_v53 = vpack.c.bf16 %v206_v50, %v205_v49 }
  0xe5   :  { %v768_v54 = vpop.f32.mrb[4].mxu0  ;;  %v219_v55 = vpack.c.bf16 %v204_v52, %v203_v51 }
  0xe6   :  { %v165_v56 = vadd.f32 %v768_v54, %v678_v40  ;;  %v156_v57 = vpop.f32.mrb[5].mxu0 }
  0xe7   :  { %v157_v58 = vadd.f32 %v678_v40, %v156_v57  ;;  %v769_v59 = vpop.f32.mrb[6].mxu0  ;;  %794 = vmatprep.mubr.bf16.mxu1 %v219_v55 }
  0xe8   :  { %v209_v60 = vmax.f32 %v165_v56, 0.0  ;;  %v168_v61 = vadd.f32 %v769_v59, %v678_v40  ;;  %v159_v62 = vpop.f32.mrb[7].mxu0  ;;  %795 = vmatmul.mubr.bf16.vlgmr.msra.gmra.mrb[0].mxu1 %v220_v53 }
  0xe9   :  { %v207_v63 = vmax.f32 %v157_v58, 0.0  ;;  %v160_v0 = vadd.f32 %v678_v40, %v159_v62 }
  0xea   :  { %v210_v1 = vmax.f32 %v168_v61, 0.0 }
  0xeb   :  { %v208_v2 = vmax.f32 %v160_v0, 0.0 }
  0xec   :  { %v222_v3 = vpack.c.bf16 %v210_v1, %v209_v60 }
  0xed   :  { %v221_v4 = vpack.c.bf16 %v208_v2, %v207_v63  ;;  %v772_v5 = vpop.f32.mrb[8].mxu0 }
  0xee   :  { %v181_v6 = vadd.f32 %v772_v5, %v678_v40  ;;  %v172_v7 = vpop.f32.mrb[9].mxu0 }
  0xef   :  { %798 = vmatprep.mubr.bf16.mxu1 %v221_v4  ;;  %v173_v8 = vadd.f32 %v678_v40, %v172_v7  ;;  %v773_v9 = vpop.f32.mrb[10].mxu0 }
  0xf0   :  { %799 = vmatmul.mubr.bf16.gmra.mrb[4].mxu1 %v222_v3  ;;  %v213_v10 = vmax.f32 %v181_v6, 0.0  ;;  %v184_v11 = vadd.f32 %v773_v9, %v678_v40  ;;  %v175_v12 = vpop.f32.mrb[11].mxu0 }
  0xf1   :  { %v211_v13 = vmax.f32 %v173_v8, 0.0  ;;  %v176_v14 = vadd.f32 %v678_v40, %v175_v12 }
  0xf2   :  { %v214_v15 = vmax.f32 %v184_v11, 0.0 }
  0xf3   :  { %v212_v16 = vmax.f32 %v176_v14, 0.0 }
  0xf4   :  { %v224_v17 = vpack.c.bf16 %v214_v15, %v213_v10 }
  0xf5   :  { %v223_v18 = vpack.c.bf16 %v212_v16, %v211_v13  ;;  %v776_v19 = vpop.f32.mrb[12].mxu0 }
  0xf6   :  { %v197_v20 = vadd.f32 %v776_v19, %v678_v40  ;;  %v188_v21 = vpop.f32.mrb[13].mxu0 }
  0xf7   :  { %802 = vmatprep.mubr.bf16.mxu1 %v223_v18  ;;  %v189_v22 = vadd.f32 %v678_v40, %v188_v21  ;;  %v777_v23 = vpop.f32.mrb[14].mxu0 }
  0xf8   :  { %803 = vmatmul.mubr.bf16.gmra.mrb[8].mxu1 %v224_v17  ;;  %v217_v24 = vmax.f32 %v197_v20, 0.0  ;;  %v200_v25 = vadd.f32 %v777_v23, %v678_v40  ;;  %v191_v26 = vpop.f32.mrb[15].mxu0 }
  0xf9   :  { %v215_v27 = vmax.f32 %v189_v22, 0.0  ;;  %v192_v28 = vadd.f32 %v678_v40, %v191_v26 }
  0xfa   :  { %v218_v29 = vmax.f32 %v200_v25, 0.0 }
  0xfb   :  { %v216_v30 = vmax.f32 %v192_v28, 0.0  ;;  %v913_v28 = vmov 0.0  }
  0xfc   :  { %v226_v31 = vpack.c.bf16 %v218_v29, %v217_v24  ;;  %842 = vmatprep.subr.bf16.mxu1 %v913_v28  ;;  %v612_v29 = vld [vmem:[%s1121_s8] sm:$0xff] }
  0xfd   :  { %v225_v32 = vpack.c.bf16 %v216_v30, %v215_v27  ;;  %v915_v30 = vmov 0  }
  0xfe   :  { %866 = vset.pattern.permute.xlu0 %v915_v30 }
  0xff   :  { %806 = vmatprep.mubr.bf16.mxu1 %v225_v32  ;;  %615 = vperm.xlu0 %866, %v612_v29  }
 0x100   :  { %807 = vmatmul.mubr.bf16.gmra.mrb[12].mxu1 %v226_v31  ;;  %v698_v31 = vld [vmem:[%s1119_s6] ss:$0 sm:$0xff] }
 0x101   :  { %858 = vmatprep.mubr.msk.bf16.mxu1 %vm914_vm1, %v913_v28 }
 0x1bb   :  { %v796_v36 = vpop.f32.mrb[0].mxu1 }
 0x1bc   :  { %v341_v37 = vadd.f32 %v796_v36, %v689_v35  ;;  %v332_v38 = vpop.f32.mrb[1].mxu1 }
 0x1bd   :  { %v333_v39 = vadd.f32 %v689_v35, %v332_v38  ;;  %v797_v40 = vpop.f32.mrb[2].mxu1 }
 0x1be   :  { %v344_v41 = vadd.f32 %v797_v40, %v689_v35  ;;  %v335_v42 = vpop.f32.mrb[3].mxu1  ;;  %v397_v44 = vmax.f32 %v341_v37, 0.0 }
 0x1bf   :  { %v336_v43 = vadd.f32 %v689_v35, %v335_v42  ;;  %v395_v46 = vmax.f32 %v333_v39, 0.0 }
 0x1c0   :  { %v398_v45 = vmax.f32 %v344_v41, 0.0 }
 0x1c1   :  { %v396_v47 = vmax.f32 %v336_v43, 0.0 }
 0x1c2   :  { %v412_v48 = vpack.c.bf16 %v398_v45, %v397_v44 }
 0x1c3   :  { %v411_v49 = vpack.c.bf16 %v396_v47, %v395_v46  ;;  %v800_v50 = vpop.f32.mrb[4].mxu1 }
 0x1c4   :  { %v357_v51 = vadd.f32 %v800_v50, %v689_v35  ;;  %v348_v52 = vpop.f32.mrb[5].mxu1 }
 0x1c5   :  { %v349_v53 = vadd.f32 %v689_v35, %v348_v52  ;;  %v801_v54 = vpop.f32.mrb[6].mxu1  ;;  %826 = vmatprep.mubr.bf16.mxu0 %v411_v49 }
 0x1c6   :  { %v401_v55 = vmax.f32 %v357_v51, 0.0  ;;  %v360_v56 = vadd.f32 %v801_v54, %v689_v35  ;;  %v351_v57 = vpop.f32.mrb[7].mxu1  ;;  %827 = vmatmul.mubr.bf16.vlgmr.msra.gmra.mrb[16].mxu0 %v412_v48 }
 0x1c7   :  { %v399_v58 = vmax.f32 %v349_v53, 0.0  ;;  %v352_v59 = vadd.f32 %v689_v35, %v351_v57 }
 0x1c8   :  { %v402_v60 = vmax.f32 %v360_v56, 0.0 }
 0x1c9   :  { %v400_v61 = vmax.f32 %v352_v59, 0.0 }
 0x1ca   :  { %v414_v62 = vpack.c.bf16 %v402_v60, %v401_v55 }
 0x1cb   :  { %v413_v63 = vpack.c.bf16 %v400_v61, %v399_v58  ;;  %v804_v0 = vpop.f32.mrb[8].mxu1 }
 0x1cc   :  { %v373_v1 = vadd.f32 %v804_v0, %v689_v35  ;;  %v364_v2 = vpop.f32.mrb[9].mxu1 }
 0x1cd   :  { %830 = vmatprep.mubr.bf16.mxu0 %v413_v63  ;;  %v365_v3 = vadd.f32 %v689_v35, %v364_v2  ;;  %v805_v4 = vpop.f32.mrb[10].mxu1 }
 0x1ce   :  { %831 = vmatmul.mubr.bf16.gmra.mrb[20].mxu0 %v414_v62  ;;  %v405_v5 = vmax.f32 %v373_v1, 0.0  ;;  %v376_v6 = vadd.f32 %v805_v4, %v689_v35  ;;  %v367_v7 = vpop.f32.mrb[11].mxu1 }
 0x1cf   :  { %v403_v8 = vmax.f32 %v365_v3, 0.0  ;;  %v368_v9 = vadd.f32 %v689_v35, %v367_v7 }
 0x1d0   :  { %v406_v10 = vmax.f32 %v376_v6, 0.0 }
 0x1d1   :  { %v404_v11 = vmax.f32 %v368_v9, 0.0 }
 0x1d2   :  { %v416_v12 = vpack.c.bf16 %v406_v10, %v405_v5 }
 0x1d3   :  { %v415_v13 = vpack.c.bf16 %v404_v11, %v403_v8  ;;  %v808_v14 = vpop.f32.mrb[12].mxu1 }
 0x1d4   :  { %v389_v15 = vadd.f32 %v808_v14, %v689_v35  ;;  %v380_v16 = vpop.f32.mrb[13].mxu1 }
 0x1d5   :  { %834 = vmatprep.mubr.bf16.mxu0 %v415_v13  ;;  %v381_v17 = vadd.f32 %v689_v35, %v380_v16  ;;  %v809_v18 = vpop.f32.mrb[14].mxu1 }
 0x1d6   :  { %835 = vmatmul.mubr.bf16.gmra.mrb[24].mxu0 %v416_v12  ;;  %v409_v19 = vmax.f32 %v389_v15, 0.0  ;;  %v392_v20 = vadd.f32 %v809_v18, %v689_v35  ;;  %v383_v21 = vpop.f32.mrb[15].mxu1 }
 0x1d7   :  { %v407_v22 = vmax.f32 %v381_v17, 0.0  ;;  %v384_v23 = vadd.f32 %v689_v35, %v383_v21 }
 0x1d8   :  { %v410_v24 = vmax.f32 %v392_v20, 0.0 }
 0x1d9   :  { %v408_v25 = vmax.f32 %v384_v23, 0.0 }
 0x1da   :  { %v418_v26 = vpack.c.bf16 %v410_v24, %v409_v19  ;;  %v611_v24 = vld [vmem:[%s1120_s7] sm:$0xf] }
 0x1db   :  { %v417_v27 = vpack.c.bf16 %v408_v25, %v407_v22  ;;  %v616_v25 = vpop.permute.xlu0 %615 }
 0x1dd   :  { %838 = vmatprep.mubr.bf16.mxu0 %v417_v27 }
 0x1de   :  { %839 = vmatmul.mubr.bf16.gmra.mrb[28].mxu0 %v418_v26 }
 0x299   :  { %v828_v32 = vpop.f32.mrb[16].mxu0 }
 0x29a   :  { %v533_v33 = vadd.f32 %v828_v32, %v698_v31  ;;  %v524_v34 = vpop.f32.mrb[17].mxu0 }
 0x29b   :  { %v525_v35 = vadd.f32 %v698_v31, %v524_v34  ;;  %v829_v36 = vpop.f32.mrb[18].mxu0 }
 0x29c   :  { %v536_v37 = vadd.f32 %v829_v36, %v698_v31  ;;  %v527_v38 = vpop.f32.mrb[19].mxu0  ;;  %v589_v40 = vmax.f32 %v533_v33, 0.0 }
 0x29d   :  { %v528_v39 = vadd.f32 %v698_v31, %v527_v38  ;;  %v587_v42 = vmax.f32 %v525_v35, 0.0 }
 0x29e   :  { %v590_v41 = vmax.f32 %v536_v37, 0.0 }
 0x29f   :  { %v588_v43 = vmax.f32 %v528_v39, 0.0 }
 0x2a0   :  { %v604_v44 = vpack.c.bf16 %v590_v41, %v589_v40 }
 0x2a1   :  { %v603_v45 = vpack.c.bf16 %v588_v43, %v587_v42  ;;  %v832_v46 = vpop.f32.mrb[20].mxu0 }
 0x2a2   :  { %v549_v47 = vadd.f32 %v832_v46, %v698_v31  ;;  %v540_v48 = vpop.f32.mrb[21].mxu0 }
 0x2a3   :  { %v541_v49 = vadd.f32 %v698_v31, %v540_v48  ;;  %v833_v50 = vpop.f32.mrb[22].mxu0  ;;  %843 = vmatpush3.bf16.xpose.msra.mxu1 %v603_v45 }
 0x2a4   :  { %v552_v51 = vadd.f32 %v833_v50, %v698_v31  ;;  %v543_v52 = vpop.f32.mrb[23].mxu0  ;;  %844 = vmatprep.subr.bf16.mxu1 %v913_v28  ;;  %v593_v54 = vmax.f32 %v549_v47, 0.0 }
 0x2a5   :  { %v544_v53 = vadd.f32 %v698_v31, %v543_v52  ;;  %v591_v56 = vmax.f32 %v541_v49, 0.0 }
 0x2a6   :  { %v594_v55 = vmax.f32 %v552_v51, 0.0 }
 0x2a7   :  { %v592_v57 = vmax.f32 %v544_v53, 0.0 }
 0x2a8   :  { %v606_v58 = vpack.c.bf16 %v594_v55, %v593_v54 }
 0x2a9   :  { %v605_v59 = vpack.c.bf16 %v592_v57, %v591_v56  ;;  %v836_v60 = vpop.f32.mrb[24].mxu0 }
 0x2aa   :  { %v565_v61 = vadd.f32 %v836_v60, %v698_v31  ;;  %v556_v62 = vpop.f32.mrb[25].mxu0 }
 0x2ab   :  { %845 = vmatpush3.bf16.xpose.msra.mxu1 %v604_v44  ;;  %v557_v63 = vadd.f32 %v698_v31, %v556_v62  ;;  %v837_v0 = vpop.f32.mrb[26].mxu0 }
 0x2ac   :  { %v597_v1 = vmax.f32 %v565_v61, 0.0  ;;  %v568_v2 = vadd.f32 %v837_v0, %v698_v31  ;;  %v559_v3 = vpop.f32.mrb[27].mxu0  ;;  %846 = vmatprep.subr.bf16.mxu1 %v913_v28 }
 0x2ad   :  { %v595_v4 = vmax.f32 %v557_v63, 0.0  ;;  %v560_v5 = vadd.f32 %v698_v31, %v559_v3 }
 0x2ae   :  { %v598_v6 = vmax.f32 %v568_v2, 0.0 }
 0x2af   :  { %v596_v7 = vmax.f32 %v560_v5, 0.0 }
 0x2b0   :  { %v608_v8 = vpack.c.bf16 %v598_v6, %v597_v1 }
 0x2b1   :  { %v607_v9 = vpack.c.bf16 %v596_v7, %v595_v4  ;;  %v840_v10 = vpop.f32.mrb[28].mxu0 }
 0x2b2   :  { %v581_v11 = vadd.f32 %v840_v10, %v698_v31  ;;  %v572_v12 = vpop.f32.mrb[29].mxu0 }
 0x2b3   :  { %847 = vmatpush3.bf16.xpose.msra.mxu1 %v605_v59  ;;  %v573_v13 = vadd.f32 %v698_v31, %v572_v12  ;;  %v841_v14 = vpop.f32.mrb[30].mxu0 }
 0x2b4   :  { %848 = vmatprep.subr.bf16.mxu1 %v913_v28  ;;  %v601_v15 = vmax.f32 %v581_v11, 0.0  ;;  %v584_v16 = vadd.f32 %v841_v14, %v698_v31  ;;  %v575_v17 = vpop.f32.mrb[31].mxu0 }
 0x2b5   :  { %v599_v18 = vmax.f32 %v573_v13, 0.0  ;;  %v576_v19 = vadd.f32 %v698_v31, %v575_v17 }
 0x2b6   :  { %v602_v20 = vmax.f32 %v584_v16, 0.0 }
 0x2b7   :  { %v600_v21 = vmax.f32 %v576_v19, 0.0 }
 0x2b8   :  { %v610_v22 = vpack.c.bf16 %v602_v20, %v601_v15 }
 0x2b9   :  { %v609_v23 = vpack.c.bf16 %v600_v21, %v599_v18 }
 0x2bb   :  { %849 = vmatpush3.bf16.xpose.msra.mxu1 %v606_v58 }
 0x2bc   :  { %850 = vmatprep.subr.bf16.mxu1 %v913_v28 }
 0x2c3   :  { %851 = vmatpush3.bf16.xpose.msra.mxu1 %v607_v9 }
 0x2c4   :  { %852 = vmatprep.subr.bf16.mxu1 %v913_v28 }
 0x2cb   :  { %853 = vmatpush3.bf16.xpose.msra.mxu1 %v608_v8 }
 0x2cc   :  { %854 = vmatprep.subr.bf16.mxu1 %v913_v28 }
 0x2d3   :  { %855 = vmatpush3.bf16.xpose.msra.mxu1 %v609_v23 }
 0x2d4   :  { %856 = vmatprep.subr.bf16.mxu1 %v913_v28 }
 0x2db   :  { %857 = vmatpush3.bf16.xpose.msra.mxu1 %v610_v22 }
 0x2e2   :  { %859 = vmatmul.mubr.bf16.vlgmr.msra.gmra.mrb[16].mxu1 %v611_v24 }
 0x3b5   :  { %v652_v26 = vpop.f32.mrb[16].mxu1 }
 0x3b6   :  { %v653_v27 = vadd.f32 %v652_v26, %v616_v25  ;;  %v860_v29 = vpop.f32.mrb[17].mxu1 }
 0x3b7   :  { %v655_v30 = vpop.f32.mrb[18].mxu1 }
 0x3b8   :  { %v658_v31 = vsub.f32 0.0, %v653_v27  ;;  %v861_v32 = vpop.f32.mrb[19].mxu1 }
 0x3ba   :  { %v659_v33 = vmul.f32 1.442695, %v658_v31 }
 0x3bc   :  { %885 = vpow2.f32 %v659_v33 }
 0x3c6   :  { %v886_v34 = vpop.eup %885 }
 0x3c7   :  { %v661_v35 = vadd.f32 1.0, %v886_v34 }
 0x3c9   :  { %887 = vrcp.f32 %v661_v35 }
 0x3d3   :  { %v888_v28 = vpop.eup %887 }
 0x3d4   :  { %663 = vst [vmem:[#allocation2] sm:$0xff] %v888_v28 }
 0x3d5   :  { %900 = shalt.err (!%p897_p4)
}
 0x3d6   :  { %s901_s0 = scalar_lea.hbm %s1122_s9, 128 }
 0x3d7   :  { %p902_p5 = scmp.ne.s32.totalorder %s1122_s9, %s901_s0  ;;  %p905_p6 = scmp.lt.u32.totalorder %s901_s0, %s1122_s9 }
 0x3d9   :  { %p907_p7 = pnand %p905_p6, %p902_p5 }
 0x3db   :  { %910 = shalt.err (!%p907_p7)
}
 0x3dc   :  { %673 = dma.vmem_to_hbm [thread:$0]  %s671_s15, 128, %s1122_s9, [#allocation3]  }
 0x3dd   :  { %911 = dma.done.wait [#allocation3], 128  }
 0x3de   :  { %912 = vsyncadd [#allocation3], 4294967168 }
 0x3df   :  { %677 = vsyncpa [#allocation3], 1 }

</bundles_post_ra>
